<compile_context>
chip_gen: v7x
topology: tpu7x:2x2x1
jax: 0.10.0
libtpu: 0.0.40
codegen_flags: <defaults>
</compile_context>

<pallas_src>
import functools

import jax
import jax.numpy as jnp
from jax.experimental import pallas as pl
from jax.experimental.pallas import tpu as pltpu

_LANE = 128


def _sublane_pack(dtype):
    itemsize = jnp.dtype(dtype).itemsize
    if itemsize >= 4:
        return 8
    if itemsize == 2:
        return 16
    return 32


def _vmem_budget_and_limit():
    """(per-step block budget, scoped vmem limit) in bytes, per TPU generation."""
    cap = None
    try:
        cap = getattr(pltpu.get_tpu_info(), "vmem_capacity_bytes", None)
    except Exception:
        cap = None
    if cap is None:
        cap = 64 * 1024 * 1024            # conservative default (v7x per-TC)
    if cap >= 96 * 1024 * 1024:           # 128-MiB parts: v5e / v6e
        return 32 * 1024 * 1024, 64 * 1024 * 1024
    # 64-MiB-per-TC parts (v7x): keep the double-buffered working set small
    # relative to physical VMEM.
    return 24 * 1024 * 1024, 48 * 1024 * 1024


def _tp_avg_kernel(t_len, inv_t, x_ref, o_ref):
    # x_ref: (BN, T, TF) block, o_ref: (BN, TF) block.
    # Per-frame accumulation into a (BN, TF) f32 accumulator: never
    # materialises a full (BN, T, TF) f32 temporary (matters for bf16/int8).
    # VPU adds are free filler under the DMA bound; scale by a precomputed 1/T.
    acc = x_ref[:, 0, :].astype(jnp.float32)
    for t in range(1, t_len):             # T is static (small for this module)
        acc = acc + x_ref[:, t, :].astype(jnp.float32)
    o_ref[...] = (acc * inv_t).astype(o_ref.dtype)


def _tp_center_kernel(x_ref, o_ref):
    # The T dim is squeezed away in the BlockSpec (only the centre frame was
    # DMA'd), so this is a straight sublane/lane-dense 2-D copy.
    o_ref[...] = x_ref[...]


@functools.partial(jax.jit, static_argnames=("pool_type",))
def tp_forward(x, pool_type="avg"):
    """Temporal pooling. x: [N, T, *] -> [N, *]."""
    N, T = x.shape[0], x.shape[1]
    rest = x.shape[2:]
    F = 1
    for d in rest:
        F *= d
    x_flat = x.reshape(N, T, F)           # metadata-only on a contiguous array

    if pool_type == "avg":
        t_in = T                          # full temporal extent per input block
        kernel = functools.partial(_tp_avg_kernel, T, 1.0 / T)
    elif pool_type == "center":
        t_in = 1                          # only the centre frame is DMA'd
        kernel = _tp_center_kernel
    else:
        # TODO(synk): 'color' pooling is `pass` (undefined) in the reference module.
        raise NotImplementedError(f"pool_type={pool_type!r} not supported")

    itemsize = jnp.dtype(x.dtype).itemsize
    sub = _sublane_pack(x.dtype)
    budget, vmem_limit = _vmem_budget_and_limit()

    def per_row_bytes(tf):
        # double-buffered input row + double-buffered output row + f32 acc row
        return 2 * t_in * tf * itemsize + 2 * tf * itemsize + 4 * tf

    if per_row_bytes(F) * min(N, sub) <= budget:
        # Preferred: keep the whole feature axis per block (one long linear DMA
        # per grid step; block dim == full F is legal even if F % 128 != 0) and
        # tile the batch axis in sublane-pack multiples.
        tf = F
        max_bn = budget // per_row_bytes(F)
        bn = N if max_bn >= N else max(sub, (max_bn // sub) * sub)
        bn = min(bn, N)
    else:
        # A handful of full-F rows does not fit: tile the feature axis in
        # multiples of 128; the last partial block is handled by Pallas edge
        # masking (garbage lanes never land in output columns < F).
        bn = min(N, sub)
        if F <= _LANE:
            tf = F
        else:
            max_tf = budget // (bn * (2 * t_in * itemsize + 2 * itemsize + 4))
            tf = max(_LANE, min((max_tf // _LANE) * _LANE, (F // _LANE) * _LANE))

    n_blocks = pl.cdiv(N, bn)
    f_blocks = pl.cdiv(F, tf)

    # Dual-TC (v7x megacore) heuristic: expose >= 2 parallel blocks whenever the
    # problem has anything worth splitting.
    if n_blocks * f_blocks == 1:
        if F >= 2 * _LANE:
            tf = _LANE * pl.cdiv(pl.cdiv(F, 2), _LANE)   # multiple of 128, < F
            f_blocks = pl.cdiv(F, tf)
        elif N > sub:
            bn = sub * pl.cdiv(pl.cdiv(N, 2), sub)       # stays sublane-dense
            n_blocks = pl.cdiv(N, bn)
    grid = (n_blocks, f_blocks)

    t_center = T // 2
    if pool_type == "avg":
        in_spec = pl.BlockSpec((bn, T, tf), lambda n, f: (n, 0, f))
    else:  # 'center': squeezed T dim -> DMA only the centre frame.
        in_spec = pl.BlockSpec((bn, None, tf), lambda n, f: (n, t_center, f))

    out_flat = pl.pallas_call(
        kernel,
        out_shape=jax.ShapeDtypeStruct((N, F), x.dtype),
        grid_spec=pltpu.PrefetchScalarGridSpec(
            num_scalar_prefetch=0,
            grid=grid,
            in_specs=[in_spec],
            out_specs=pl.BlockSpec((bn, tf), lambda n, f: (n, f)),
        ),
        compiler_params=pltpu.CompilerParams(
            dimension_semantics=("parallel", "parallel"),
            vmem_limit_bytes=vmem_limit,
        ),
    )(x_flat)

    return out_flat.reshape((N,) + rest)


if __name__ == "__main__":
    k0, k1 = jax.random.split(jax.random.PRNGKey(0))

    # Small [N, T, C, H, W] shapes consistent with the module's usage.
    N, T, C, H, W = 2, 8, 4, 16, 16
    x = jax.random.normal(k0, (N, T, C, H, W), dtype=jnp.float32)

    # Default behavior: type='avg'
    out_avg = tp_forward(x, pool_type="avg")
    jax.block_until_ready(out_avg)
    ref_avg = jnp.mean(x, axis=1)
    assert out_avg.shape == (N, C, H, W)
    assert jnp.allclose(out_avg, ref_avg, atol=1e-5, rtol=1e-5)

    # 'center' variant.
    out_center = tp_forward(x, pool_type="center")
    jax.block_until_ready(out_center)
    ref_center = x[:, T // 2, ...]
    assert out_center.shape == (N, C, H, W)
    assert jnp.allclose(out_center, ref_center)

    # Feature size not a multiple of 128 and odd T: exercises the un-padded
    # full-dim / edge-masked lane paths.
    x2 = jax.random.normal(k1, (3, 5, 4, 15, 15), dtype=jnp.float32)
    out2_avg = tp_forward(x2, pool_type="avg")
    jax.block_until_ready(out2_avg)
    assert out2_avg.shape == (3, 4, 15, 15)
    assert jnp.allclose(out2_avg, jnp.mean(x2, axis=1), atol=1e-5, rtol=1e-5)

    out2_center = tp_forward(x2, pool_type="center")
    jax.block_until_ready(out2_center)
    assert jnp.allclose(out2_center, x2[:, 5 // 2, ...])

    print("KERNEL_OK")
</pallas_src>

<mosaic_0001>
module attributes {stable_mosaic.version = 11 : i64} {
  func.func @_tp_avg_kernel(%arg0: i32, %arg1: i32, %arg2: memref<2x8x512xf32, #tpu.memory_space<vmem>>, %arg3: memref<2x512xf32, #tpu.memory_space<vmem>>) attributes {dimension_semantics = [#tpu.dimension_semantics<parallel>, #tpu.dimension_semantics<parallel>], iteration_bounds = array<i64: 1, 2>, scalar_prefetch = 0 : i64, scratch_operands = 0 : i64, tpu.core_type = #tpu.core_type<tc>, window_params = [{transform_indices = @transform_0, window_bounds = array<i64: 2, 8, 512>}, {transform_indices = @transform_1, window_bounds = array<i64: 2, 512>}]} {
    %c0 = arith.constant 0 : index
    %c0_0 = arith.constant 0 : index
    %c0_1 = arith.constant 0 : index
    %0 = vector.load %arg2[%c0, %c0_0, %c0_1] : memref<2x8x512xf32, #tpu.memory_space<vmem>>, vector<2x1x512xf32>
    %1 = vector.shape_cast %0 : vector<2x1x512xf32> to vector<2x512xf32>
    %c0_2 = arith.constant 0 : index
    %c1 = arith.constant 1 : index
    %c0_3 = arith.constant 0 : index
    %2 = vector.load %arg2[%c0_2, %c1, %c0_3] : memref<2x8x512xf32, #tpu.memory_space<vmem>>, vector<2x1x512xf32>
    %3 = vector.shape_cast %2 : vector<2x1x512xf32> to vector<2x512xf32>
    %4 = arith.addf %1, %3 : vector<2x512xf32>
    %c0_4 = arith.constant 0 : index
    %c2 = arith.constant 2 : index
    %c0_5 = arith.constant 0 : index
    %5 = vector.load %arg2[%c0_4, %c2, %c0_5] : memref<2x8x512xf32, #tpu.memory_space<vmem>>, vector<2x1x512xf32>
    %6 = vector.shape_cast %5 : vector<2x1x512xf32> to vector<2x512xf32>
    %7 = arith.addf %4, %6 : vector<2x512xf32>
    %c0_6 = arith.constant 0 : index
    %c3 = arith.constant 3 : index
    %c0_7 = arith.constant 0 : index
    %8 = vector.load %arg2[%c0_6, %c3, %c0_7] : memref<2x8x512xf32, #tpu.memory_space<vmem>>, vector<2x1x512xf32>
    %9 = vector.shape_cast %8 : vector<2x1x512xf32> to vector<2x512xf32>
    %10 = arith.addf %7, %9 : vector<2x512xf32>
    %c0_8 = arith.constant 0 : index
    %c4 = arith.constant 4 : index
    %c0_9 = arith.constant 0 : index
    %11 = vector.load %arg2[%c0_8, %c4, %c0_9] : memref<2x8x512xf32, #tpu.memory_space<vmem>>, vector<2x1x512xf32>
    %12 = vector.shape_cast %11 : vector<2x1x512xf32> to vector<2x512xf32>
    %13 = arith.addf %10, %12 : vector<2x512xf32>
    %c0_10 = arith.constant 0 : index
    %c5 = arith.constant 5 : index
    %c0_11 = arith.constant 0 : index
    %14 = vector.load %arg2[%c0_10, %c5, %c0_11] : memref<2x8x512xf32, #tpu.memory_space<vmem>>, vector<2x1x512xf32>
    %15 = vector.shape_cast %14 : vector<2x1x512xf32> to vector<2x512xf32>
    %16 = arith.addf %13, %15 : vector<2x512xf32>
    %c0_12 = arith.constant 0 : index
    %c6 = arith.constant 6 : index
    %c0_13 = arith.constant 0 : index
    %17 = vector.load %arg2[%c0_12, %c6, %c0_13] : memref<2x8x512xf32, #tpu.memory_space<vmem>>, vector<2x1x512xf32>
    %18 = vector.shape_cast %17 : vector<2x1x512xf32> to vector<2x512xf32>
    %19 = arith.addf %16, %18 : vector<2x512xf32>
    %c0_14 = arith.constant 0 : index
    %c7 = arith.constant 7 : index
    %c0_15 = arith.constant 0 : index
    %20 = vector.load %arg2[%c0_14, %c7, %c0_15] : memref<2x8x512xf32, #tpu.memory_space<vmem>>, vector<2x1x512xf32>
    %21 = vector.shape_cast %20 : vector<2x1x512xf32> to vector<2x512xf32>
    %22 = arith.addf %19, %21 : vector<2x512xf32>
    %cst = arith.constant 1.250000e-01 : f32
    %23 = vector.broadcast %cst : f32 to vector<2x512xf32>
    %24 = arith.mulf %22, %23 : vector<2x512xf32>
    %c0_16 = arith.constant 0 : index
    %c0_17 = arith.constant 0 : index
    %25 = vector.load %arg3[%c0_16, %c0_17] : memref<2x512xf32, #tpu.memory_space<vmem>>, vector<2x512xf32>
    tpu.vector_store %arg3[%c0_16, %c0_17], %24 {strides = array<i32>} : memref<2x512xf32, #tpu.memory_space<vmem>>, vector<2x512xf32>,
    return
  }
  func.func @transform_0(%arg0: i32, %arg1: i32) -> (i32, i32, i32) {
    %c0_i32 = arith.constant 0 : i32
    %c0_i32_0 = arith.constant 0 : i32
    return %arg0, %c0_i32, %arg1 : i32, i32, i32
  }
  func.func @transform_1(%arg0: i32, %arg1: i32) -> (i32, i32) {
    %c0_i32 = arith.constant 0 : i32
    return %arg0, %arg1 : i32, i32
  }
}

</mosaic_0001>

<bundles_post_ra>
// kernel: tp_forward.1
= control target key start
LH: loop header
LB: loop body
LE: loop exit
PB: predicated region body
PF: predicated region fallthrough
CT: control target
= control target key end

     0   :  { %s450_s6 = smov 0   ;;  %s452_s7 = smov 0   ;;  %s515_s0 = inlined_call_operand.vmem [shape: f32[2,8,1024], index: 0, kind: input, shape index: {}]   ;;  %s516_s1 = inlined_call_operand.vmem [shape: f32[2,1024], index: 1, kind: output, shape index: {}]  }
   0x1   :  { %s454_s8 = smov 0   ;;  %s456_s9 = smov 0  }
   0x2   :  { %s458_s10 = smov 0  }
   0x3 LB: > { %s20_s11 = sadd.s32 1, %s434_s9  ;;  %p39_p1 = scmp.ne.s32.totalorder %s426_s7, %s422_s6  ;;  %s438_s10 = sphi %s458_s10, %s11_s10   ;;  %s434_s9 = sphi %s456_s9, %s520_s9   ;;  %s430_s8 = sphi %s454_s8, %s519_s8   ;;  %s426_s7 = sphi %s452_s7, %s518_s7   ;;  %s422_s6 = sphi %s450_s6, %s517_s6  }
   0x4   : > { %p21_p0 = scmp.ge.s32.totalorder %s20_s11, 2  ;;  %p40_p2 = scmp.eq.s32.totalorder %s438_s10, 0 }
   0x5   : > { %s32_s13 = sadd.s32 1, %s426_s7  ;;  %p333_p5 = scmp.ge.s32.totalorder %s438_s10, 2 }
   0x6   : > { %s522_s11 = smov (%p21_p0, %s20_s11), 0  ;;  %p41_p3 = por %p40_p2, %p39_p1 }
   0x7   : > { %s28_s12 = ssub.s32 %s434_s9, %s522_s11  ;;  %93 = sbr.rel (%p333_p5) target bundleno = 22 (0x16), region = 16 }
   0x8   : > { %p30_p4 = scmp.eq.s32.totalorder %s28_s12, 0 }
   0xa   : > { %s485_s14 = scalar_select %p30_p4, %s426_s7, %s32_s13  }
   0xe   : > { %96 = sbr.rel (!%p41_p3) target bundleno = 22 (0x16), region = 20  ;;  %s98_s15 = sand.u32 (%p41_p3), 1, %s426_s7  }
   0xf   : > { %s359_s16 = sshll.u32 (%p41_p3), %s434_s9, 5  ;;  %s334_s17 = sshll.u32 (%p41_p3), %s98_s15, 6 }
  0x10   : > { %s106_s20 = scalar_lea.vmem (%p41_p3), %s515_s0, %s359_s16  ;;  %s100_s21 = scalar_lea.vmem (%p41_p3), [#allocation2], %s334_s17 }
  0x11   : > { %v119_v0 = vld [vmem:[%s106_s20] sm:$0xff] (%p41_p3)  ;;  %v121_v1 = vld [vmem:[%s106_s20 + $0x8] sm:$0xff] (%p41_p3)  ;;  %v123_v2 = vld [vmem:[%s106_s20 + $0x10] sm:$0xff] (%p41_p3) }
  0x12   : > { %120 = vst [vmem:[%s100_s21] sm:$0xff] (%p41_p3), %v119_v0  ;;  %122 = vst [vmem:[%s100_s21 + $0x8] sm:$0xff] (%p41_p3), %v121_v1  ;;  %v125_v3 = vld [vmem:[%s106_s20 + $0x18] sm:$0xff] (%p41_p3)  ;;  %v127_v4 = vld [vmem:[%s106_s20 + $0x40] sm:$0xff] (%p41_p3) }
  0x13   : > { %124 = vst [vmem:[%s100_s21 + $0x10] sm:$0xff] (%p41_p3), %v123_v2  ;;  %v129_v5 = vld [vmem:[%s106_s20 + $0x48] sm:$0xff] (%p41_p3)  ;;  %126 = vst [vmem:[%s100_s21 + $0x18] sm:$0xff] (%p41_p3), %v125_v3  ;;  %v131_v6 = vld [vmem:[%s106_s20 + $0x50] sm:$0xff] (%p41_p3) }
  0x14   : > { %128 = vst [vmem:[%s100_s21 + $0x20] sm:$0xff] (%p41_p3), %v127_v4  ;;  %130 = vst [vmem:[%s100_s21 + $0x28] sm:$0xff] (%p41_p3), %v129_v5  ;;  %v133_v7 = vld [vmem:[%s106_s20 + $0x58] sm:$0xff] (%p41_p3) }
  0x15   : > { %132 = vst [vmem:[%s100_s21 + $0x30] sm:$0xff] %v131_v6  ;;  %134 = vst [vmem:[%s100_s21 + $0x38] sm:$0xff] %v133_v7 }
  0x16 PF: > { %p337_p6 = scmp.ge.s32.totalorder %s438_s10, 1  ;;  %p139_p7 = scmp.lt.s32.totalorder %s438_s10, 3 }
  0x18   : > { %p140_p8 = pnand %p337_p6, %p139_p7 }
  0x19   : > { %s146_s22 = sand.u32 (!%p140_p8), 1, %s422_s6   ;;  %s339_s25 = sshll.u32 (!%p140_p8), %s430_s8, 2 }
  0x1a   : > { %143 = sbr.rel (%p140_p8) target bundleno = 49 (0x31), region = 43  ;;  %s338_s23 = sshll.u32 (!%p140_p8), %s146_s22, 6 }
  0x1b   : > { %s148_s24 = scalar_lea.vmem (!%p140_p8), [#allocation2], %s338_s23  ;;  %p174_p9 = scmp.lt.s32.totalorder (!%p140_p8), %s339_s25, 7 }
  0x1c   : > { %v181_v8 = vld [vmem:[%s148_s24] ss:$8 sm:$0xf] (!%p140_p8)  ;;  %v342_v10 = vld [vmem:[%s148_s24 + $0x1] ss:$8 sm:$0xf] (!%p140_p8) }
  0x1d   : > { %v341_v9 = vld [vmem:[%s148_s24 + $0x20] ss:$8 sm:$0xf] (!%p140_p8)  ;;  %v343_v11 = vld [vmem:[%s148_s24 + $0x21] ss:$8 sm:$0xf] (!%p140_p8)  ;;  %v188_v12 = vadd.f32 (!%p140_p8), %v342_v10, %v181_v8 }
  0x1e   : > { %v189_v13 = vadd.f32 (!%p140_p8), %v343_v11, %v341_v9  ;;  %v344_v14 = vld [vmem:[%s148_s24 + $0x2] ss:$8 sm:$0xf] (!%p140_p8)  ;;  %v346_v17 = vld [vmem:[%s148_s24 + $0x3] ss:$8 sm:$0xf] (!%p140_p8) }
  0x1f   : > { %v345_v15 = vld [vmem:[%s148_s24 + $0x22] ss:$8 sm:$0xf] (!%p140_p8)  ;;  %v194_v16 = vadd.f32 (!%p140_p8), %v344_v14, %v188_v12  ;;  %v347_v18 = vld [vmem:[%s148_s24 + $0x23] ss:$8 sm:$0xf] (!%p140_p8) }
  0x20   : > { %v195_v19 = vadd.f32 (!%p140_p8), %v345_v15, %v189_v13  ;;  %v348_v20 = vld [vmem:[%s148_s24 + $0x4] ss:$8 sm:$0xf] (!%p140_p8)  ;;  %v350_v24 = vld [vmem:[%s148_s24 + $0x5] ss:$8 sm:$0xf] (!%p140_p8) }
  0x21   : > { %v200_v21 = vadd.f32 %v346_v17, %v194_v16  ;;  %v349_v22 = vld [vmem:[%s148_s24 + $0x24] ss:$8 sm:$0xf]  ;;  %v351_v26 = vld [vmem:[%s148_s24 + $0x25] ss:$8 sm:$0xf] }
  0x22   : > { %v201_v23 = vadd.f32 %v347_v18, %v195_v19  ;;  %v352_v28 = vld [vmem:[%s148_s24 + $0x6] ss:$8 sm:$0xf]  ;;  %s524_s25 = smov (!%p174_p9, %s339_s25), 7 }
  0x23   : > { %v206_v25 = vadd.f32 %v348_v20, %v200_v21  ;;  %v353_v30 = vld [vmem:[%s148_s24 + $0x26] ss:$8 sm:$0xf]  ;;  %v354_v32 = vld [vmem:[%s148_s24 + $0x7] ss:$8 sm:$0xf] }
  0x24   : > { %v207_v27 = vadd.f32 %v349_v22, %v201_v23  ;;  %v355_v34 = vld [vmem:[%s148_s24 + $0x27] ss:$8 sm:$0xf]  ;;  %s340_s26 = sshll.u32 %s524_s25, 1 }
  0x25   : > { %v212_v29 = vadd.f32 %v350_v24, %v206_v25  ;;  %s179_s29 = scalar_lea.vmem %s516_s1, %s340_s26 }
  0x26   : > { %v213_v31 = vadd.f32 %v351_v26, %v207_v27 }
  0x27   : > { %v218_v33 = vadd.f32 %v352_v28, %v212_v29 }
  0x28   : > { %v219_v35 = vadd.f32 %v353_v30, %v213_v31 }
  0x29   : > { %v224_v36 = vadd.f32 %v354_v32, %v218_v33 }
  0x2a   : > { %v225_v37 = vadd.f32 %v355_v34, %v219_v35 }
  0x2b   : > { %v226_v38 = vmul.f32 0.125, %v224_v36 }
  0x2c   : > { %v227_v39 = vmul.f32 0.125, %v225_v37 }
  0x2e   : > { %v230_v40 = vcombine.low %v226_v38, %v227_v39 }
  0x30   : > { %356 = vst.sshfl [vmem:[%s179_s29] sm:$0xff pattern:$0x75316420] %v230_v40 }
  0x31 PF: > { %s11_s10 = sadd.s32 1, %s438_s10   ;;  %s517_s6 = smov %s426_s7 }
  0x32   : > { %p8_p10 = scmp.ge.s32.totalorder %s11_s10, 4   ;;  %s518_s7 = smov %s485_s14 }
  0x33   : > { %s519_s8 = smov %s434_s9  ;;  %s520_s9 = smov %s522_s11 }
  0x34   :  { %10 = sbr.rel (!%p8_p10) target bundleno = 3 (0x3), region = 97 }

</bundles_post_ra>
